<compile_context>
chip_gen: v7x
topology: tpu7x:2x2x1
jax: 0.10.0
libtpu: 0.0.40
codegen_flags: <defaults>
</compile_context>

<pallas_src>
import functools

import jax
import jax.numpy as jnp
from jax.experimental import pallas as pl
from jax.experimental.pallas import tpu as pltpu


def _round_up(n, m):
    return ((n + m - 1) // m) * m


def _leaky_relu(x, negative_slope=0.2):
    # Shared by the kernel and the pure-JAX reference so rounding matches.
    return jnp.where(x > 0, x, negative_slope * x)


# ----------------------------------------------------------------------------
# Generation detection / per-generation configuration
# ----------------------------------------------------------------------------

def _tpu_generation():
    try:
        kind = jax.devices()[0].device_kind.lower()
    except Exception:
        return 0
    for g in (7, 6, 5, 4):
        if f"v{g}" in kind or f"tpu{g}" in kind or f"tpu {g}" in kind:
            return g
    return 0


def _generation_config(gen):
    mib = 1024 * 1024
    if gen >= 7:      # 2 TensorCores, 64 MiB VMEM / TC, fastest HBM
        return dict(n_split=2, block_b=1024, ew_dtype=jnp.bfloat16,
                    vmem_limit=48 * mib, vmem_budget=40 * mib)
    if gen == 6:      # 1 TC, 128 MiB VMEM, bf16 VPU/EUP
        return dict(n_split=1, block_b=2048, ew_dtype=jnp.bfloat16,
                    vmem_limit=100 * mib, vmem_budget=88 * mib)
    if gen in (4, 5):  # 1 TC, 128 MiB VMEM, no bf16 VPU/EUP -> f32 elementwise
        return dict(n_split=1, block_b=2048, ew_dtype=jnp.float32,
                    vmem_limit=96 * mib, vmem_budget=80 * mib)
    # Unknown chip: conservative settings (same limit the previous version used).
    return dict(n_split=1, block_b=1024, ew_dtype=jnp.float32,
                vmem_limit=48 * mib, vmem_budget=40 * mib)


def _select_tile(B, D, Hp, block_b, n_split, vmem_budget, ew_bytes, wbuf):
    """Largest 128-aligned batch tile that fits the VMEM budget."""
    if B <= 256:
        return B  # single full-extent block: always layout-legal, no masking
    cap = _round_up(pl.cdiv(B, n_split), 128)   # >= n_split blocks when split
    tb = min(max(128, _round_up(block_b, 128)), cap)

    def fits(t):
        need = (2 * t * D * 2                        # x tile, bf16, double-buffered
                + 2 * t * 4                          # (1, t) f32 out, double-buffered
                + wbuf * 2 * (D * Hp + Hp * Hp + Hp)  # bf16 weights (w1, w2, w3)
                + wbuf * 4 * 2 * Hp + 64             # f32 biases
                + 2 * t * Hp * ew_bytes              # two live (t, Hp) intermediates
                + t * Hp * 2)                        # bf16 staging for MXU input
        return need <= vmem_budget

    while tb > 128 and not fits(tb):
        tb -= 128
    if tb >= B:
        return B  # single full-extent block
    return tb


# ----------------------------------------------------------------------------
# Kernel
# ----------------------------------------------------------------------------

def _mlp_kernel(x_ref, w1_ref, b1_ref, w2_ref, b2_ref, w3_ref, b3_ref, o_ref,
                *, ew_dtype):
    """Fused 3-layer MLP for one batch tile.  Output is lane-dense: (1, tb)."""
    x = x_ref[...]                                                       # (tb, D) bf16

    h = jnp.dot(x, w1_ref[...], preferred_element_type=jnp.float32)     # (tb, Hp) f32
    h = _leaky_relu(h.astype(ew_dtype) + b1_ref[...].astype(ew_dtype))

    h = jnp.dot(h.astype(jnp.bfloat16), w2_ref[...],
                preferred_element_type=jnp.float32)                     # (tb, Hp) f32
    h = _leaky_relu(h.astype(ew_dtype) + b2_ref[...].astype(ew_dtype))

    # Last layer (out_features=1): free N=1 MXU matmul, then a tiny
    # (tb,1)->(1,tb) relayout to keep the output lane-dense.
    zc = jnp.dot(h.astype(jnp.bfloat16), w3_ref[...],
                 preferred_element_type=jnp.float32)                    # (tb, 1) f32
    z = jnp.transpose(zc) + b3_ref[0]                                   # (1, tb) f32
    o_ref[...] = jax.nn.sigmoid(z).astype(o_ref.dtype)


# ----------------------------------------------------------------------------
# Host-side wrapper
# ----------------------------------------------------------------------------

@functools.partial(jax.jit, static_argnames=("block_b", "single_buffer_weights"))
def _forward(x, w1, b1, w2, b2, w3, b3, *, block_b, single_buffer_weights):
    B, D = x.shape
    Hp = w1.shape[1]

    cfg = _generation_config(_tpu_generation())
    if block_b is None:
        block_b = cfg["block_b"]
    ew_dtype = cfg["ew_dtype"]

    # Contract: x should already be bf16 in HBM (this cast is a no-op then).
    x = x.astype(jnp.bfloat16)

    tb = _select_tile(B, D, Hp, block_b, cfg["n_split"], cfg["vmem_budget"],
                      ew_bytes=jnp.dtype(ew_dtype).itemsize,
                      wbuf=1 if single_buffer_weights else 2)
    grid = (pl.cdiv(B, tb),)

    if single_buffer_weights:
        def w_spec(shape):
            return pl.BlockSpec(shape, lambda *_: (0,) * len(shape),
                                pipeline_mode=pl.Buffered(1))
    else:
        def w_spec(shape):
            return pl.BlockSpec(shape, lambda *_: (0,) * len(shape))

    out = pl.pallas_call(
        functools.partial(_mlp_kernel, ew_dtype=ew_dtype),
        out_shape=jax.ShapeDtypeStruct((1, B), jnp.float32),
        grid_spec=pltpu.PrefetchScalarGridSpec(
            num_scalar_prefetch=0,
            grid=grid,
            in_specs=[
                pl.BlockSpec((tb, D), lambda i: (i, 0)),       # x tile (batch-tiled)
                w_spec((D, Hp)),                               # w1 (grid-invariant)
                w_spec((1, Hp)),                               # b1
                w_spec((Hp, Hp)),                              # w2
                w_spec((1, Hp)),                               # b2
                w_spec((Hp, 1)),                               # w3 (column vector)
                pl.BlockSpec(memory_space=pltpu.MemorySpace.SMEM),  # b3 scalar
            ],
            out_specs=pl.BlockSpec((1, tb), lambda i: (0, i)),  # lane-dense output
        ),
        compiler_params=pltpu.CompilerParams(
            dimension_semantics=("parallel",),
            vmem_limit_bytes=cfg["vmem_limit"],
        ),
    )(x, w1, b1, w2, b2, w3, b3)

    return out.reshape(B, 1)


_SINGLE_BUFFER_WEIGHTS_OK = None   # cached: does this JAX accept pl.Buffered(1)?


def discriminator_forward(x, w1, b1, w2, b2, w3, b3, *, block_b=None):
    """x: [B, image_size] (bf16 preferred) -> [B, 1] float32 probabilities."""
    global _SINGLE_BUFFER_WEIGHTS_OK
    if _SINGLE_BUFFER_WEIGHTS_OK is None:
        try:
            out = _forward(x, w1, b1, w2, b2, w3, b3,
                           block_b=block_b, single_buffer_weights=True)
            _SINGLE_BUFFER_WEIGHTS_OK = True
            return out
        except Exception:
            _SINGLE_BUFFER_WEIGHTS_OK = False
    return _forward(x, w1, b1, w2, b2, w3, b3,
                    block_b=block_b,
                    single_buffer_weights=_SINGLE_BUFFER_WEIGHTS_OK)


# ----------------------------------------------------------------------------
# Parameter init (nn.Linear-style) and pure-JAX reference
# ----------------------------------------------------------------------------

def init_discriminator_params(key, image_size, hidden_size, *, lane=128):
    """Uniform +/- 1/sqrt(fan_in) init, weights stored [in, out] in bf16,
    biases f32.  Hidden dim is zero-padded to a multiple of `lane` (exact:
    padded units have zero weight, bias, and outgoing weight).  The last
    layer's weight is a (Hp, 1) column; its bias is a (1,) scalar."""
    Hp = _round_up(hidden_size, lane)

    def linear(k, fan_in, fan_out):
        kw, kb = jax.random.split(k)
        bound = 1.0 / (fan_in ** 0.5)
        w = jax.random.uniform(kw, (fan_in, fan_out), jnp.float32, -bound, bound)
        b = jax.random.uniform(kb, (fan_out,), jnp.float32, -bound, bound)
        return w, b

    k1, k2, k3 = jax.random.split(key, 3)
    w1, b1 = linear(k1, image_size, hidden_size)
    w2, b2 = linear(k2, hidden_size, hidden_size)
    w3, b3 = linear(k3, hidden_size, 1)                       # (hidden, 1), (1,)

    pad_h = Hp - hidden_size
    w1 = jnp.pad(w1, ((0, 0), (0, pad_h)))
    b1 = jnp.pad(b1, (0, pad_h)).reshape(1, Hp)
    w2 = jnp.pad(w2, ((0, pad_h), (0, pad_h)))
    b2 = jnp.pad(b2, (0, pad_h)).reshape(1, Hp)
    w3 = jnp.pad(w3, ((0, pad_h), (0, 0)))                    # (Hp, 1)

    bf16 = lambda a: a.astype(jnp.bfloat16)
    return bf16(w1), b1, bf16(w2), b2, bf16(w3), b3


def _reference_forward(x, w1, b1, w2, b2, w3, b3, *, ew_dtype=jnp.float32):
    """Pure-JAX reference mirroring the kernel's mixed precision."""
    f32 = jnp.float32
    h = x.astype(jnp.bfloat16).astype(f32) @ w1.astype(f32)
    h = _leaky_relu(h.astype(ew_dtype) + b1.astype(ew_dtype))
    h = h.astype(jnp.bfloat16).astype(f32) @ w2.astype(f32)
    h = _leaky_relu(h.astype(ew_dtype) + b2.astype(ew_dtype))
    z = h.astype(jnp.bfloat16).astype(f32) @ w3.astype(f32) + b3.astype(f32)
    return jax.nn.sigmoid(z)


if __name__ == "__main__":
    key = jax.random.PRNGKey(0)
    k_params, k_x1, k_x2 = jax.random.split(key, 3)

    image_size = 64
    hidden_size = 32
    params = init_discriminator_params(k_params, image_size, hidden_size)
    ew = _generation_config(_tpu_generation())["ew_dtype"]

    # Small primary test: single full-extent block.
    batch = 8
    x = jax.random.normal(k_x1, (batch, image_size), jnp.float32).astype(jnp.bfloat16)
    out = jax.block_until_ready(discriminator_forward(x, *params))
    ref = _reference_forward(x, *params, ew_dtype=ew)
    assert out.shape == (batch, 1), out.shape
    assert jnp.allclose(out, ref, atol=2e-3, rtol=2e-3), "mismatch vs reference (B=8)"

    # Second test: larger batch (single big tile on 1-TC chips, 2 blocks with a
    # ragged masked edge on v7x).
    batch2 = 520
    x2 = jax.random.normal(k_x2, (batch2, image_size), jnp.float32).astype(jnp.bfloat16)
    out2 = jax.block_until_ready(discriminator_forward(x2, *params))
    ref2 = _reference_forward(x2, *params, ew_dtype=ew)
    assert out2.shape == (batch2, 1), out2.shape
    assert jnp.allclose(out2, ref2, atol=2e-3, rtol=2e-3), "mismatch vs reference (B=520)"

    print("KERNEL_OK")
</pallas_src>

<mosaic_0001>
module attributes {stable_mosaic.version = 11 : i64} {
  func.func @_mlp_kernel(%arg0: i32, %arg1: memref<8x64xbf16, #tpu.memory_space<vmem>>, %arg2: memref<64x128xbf16, #tpu.memory_space<vmem>>, %arg3: memref<1x128xf32, #tpu.memory_space<vmem>>, %arg4: memref<128x128xbf16, #tpu.memory_space<vmem>>, %arg5: memref<1x128xf32, #tpu.memory_space<vmem>>, %arg6: memref<128x1xbf16, #tpu.memory_space<vmem>>, %arg7: memref<1xf32, #tpu.memory_space<smem>>, %arg8: memref<1x8xf32, #tpu.memory_space<vmem>>) attributes {dimension_semantics = [#tpu.dimension_semantics<parallel>], iteration_bounds = array<i64: 1>, scalar_prefetch = 0 : i64, scratch_operands = 0 : i64, tpu.core_type = #tpu.core_type<tc>, window_params = [{transform_indices = @transform_0, window_bounds = array<i64: 8, 64>}, {pipeline_mode = #tpu.pipeline_mode<synchronous>, transform_indices = @transform_1, window_bounds = array<i64: 64, 128>}, {pipeline_mode = #tpu.pipeline_mode<synchronous>, transform_indices = @transform_2, window_bounds = array<i64: 1, 128>}, {pipeline_mode = #tpu.pipeline_mode<synchronous>, transform_indices = @transform_3, window_bounds = array<i64: 128, 128>}, {pipeline_mode = #tpu.pipeline_mode<synchronous>, transform_indices = @transform_4, window_bounds = array<i64: 1, 128>}, {pipeline_mode = #tpu.pipeline_mode<synchronous>, transform_indices = @transform_5, window_bounds = array<i64: 128, 1>}, {transform_indices = @transform_6, window_bounds = array<i64: 1>}, {transform_indices = @transform_7, window_bounds = array<i64: 1, 8>}]} {
    %c0 = arith.constant 0 : index
    %c0_0 = arith.constant 0 : index
    %0 = vector.load %arg1[%c0, %c0_0] : memref<8x64xbf16, #tpu.memory_space<vmem>>, vector<8x64xbf16>
    %c0_1 = arith.constant 0 : index
    %c0_2 = arith.constant 0 : index
    %1 = vector.load %arg2[%c0_1, %c0_2] : memref<64x128xbf16, #tpu.memory_space<vmem>>, vector<64x128xbf16>
    %cst = arith.constant dense<0.000000e+00> : vector<8x128xf32>
    %2 = tpu.matmul %0, %1, %cst {dimension_numbers = #tpu.dot_dimension_numbers<[1], [0], [0], [1], [0, 0, 1, 1], [], []>} : vector<8x64xbf16>, vector<64x128xbf16>, vector<8x128xf32> -> vector<8x128xf32>
    %c0_3 = arith.constant 0 : index
    %c0_4 = arith.constant 0 : index
    %3 = vector.load %arg3[%c0_3, %c0_4] : memref<1x128xf32, #tpu.memory_space<vmem>>, vector<1x128xf32>
    %4 = vector.broadcast %3 : vector<1x128xf32> to vector<8x128xf32>
    %5 = arith.addf %2, %4 : vector<8x128xf32>
    %cst_5 = arith.constant 0.000000e+00 : f32
    %6 = vector.broadcast %cst_5 : f32 to vector<8x128xf32>
    %7 = arith.cmpf ogt, %5, %6 : vector<8x128xf32>
    %cst_6 = arith.constant 2.000000e-01 : f32
    %8 = vector.broadcast %cst_6 : f32 to vector<8x128xf32>
    %9 = arith.mulf %8, %5 : vector<8x128xf32>
    %10 = arith.select %7, %5, %9 : vector<8x128xi1>, vector<8x128xf32>
    %11 = arith.truncf %10 : vector<8x128xf32> to vector<8x128xbf16>
    %c0_7 = arith.constant 0 : index
    %c0_8 = arith.constant 0 : index
    %12 = vector.load %arg4[%c0_7, %c0_8] : memref<128x128xbf16, #tpu.memory_space<vmem>>, vector<128x128xbf16>
    %cst_9 = arith.constant dense<0.000000e+00> : vector<8x128xf32>
    %13 = tpu.matmul %11, %12, %cst_9 {dimension_numbers = #tpu.dot_dimension_numbers<[1], [0], [0], [1], [0, 0, 1, 1], [], []>} : vector<8x128xbf16>, vector<128x128xbf16>, vector<8x128xf32> -> vector<8x128xf32>
    %c0_10 = arith.constant 0 : index
    %c0_11 = arith.constant 0 : index
    %14 = vector.load %arg5[%c0_10, %c0_11] : memref<1x128xf32, #tpu.memory_space<vmem>>, vector<1x128xf32>
    %15 = vector.broadcast %14 : vector<1x128xf32> to vector<8x128xf32>
    %16 = arith.addf %13, %15 : vector<8x128xf32>
    %cst_12 = arith.constant 0.000000e+00 : f32
    %17 = vector.broadcast %cst_12 : f32 to vector<8x128xf32>
    %18 = arith.cmpf ogt, %16, %17 : vector<8x128xf32>
    %cst_13 = arith.constant 2.000000e-01 : f32
    %19 = vector.broadcast %cst_13 : f32 to vector<8x128xf32>
    %20 = arith.mulf %19, %16 : vector<8x128xf32>
    %21 = arith.select %18, %16, %20 : vector<8x128xi1>, vector<8x128xf32>
    %22 = arith.truncf %21 : vector<8x128xf32> to vector<8x128xbf16>
    %c0_14 = arith.constant 0 : index
    %c0_15 = arith.constant 0 : index
    %23 = vector.load %arg6[%c0_14, %c0_15] : memref<128x1xbf16, #tpu.memory_space<vmem>>, vector<128x1xbf16>
    %cst_16 = arith.constant dense<0.000000e+00> : vector<8x1xf32>
    %24 = tpu.matmul %22, %23, %cst_16 {dimension_numbers = #tpu.dot_dimension_numbers<[1], [0], [0], [1], [0, 0, 1, 1], [], []>} : vector<8x128xbf16>, vector<128x1xbf16>, vector<8x1xf32> -> vector<8x1xf32>
    %25 = tpu.transpose %24, [1, 0] : vector<8x1xf32> -> vector<1x8xf32>
    %c0_17 = arith.constant 0 : index
    %26 = memref.load %arg7[%c0_17] : memref<1xf32, #tpu.memory_space<smem>>
    %27 = vector.broadcast %26 : f32 to vector<1x8xf32>
    %28 = arith.addf %25, %27 : vector<1x8xf32>
    %29 = arith.negf %28 : vector<1x8xf32>
    %30 = math.exp %29 : vector<1x8xf32>
    %cst_18 = arith.constant 1.000000e+00 : f32
    %31 = vector.broadcast %cst_18 : f32 to vector<1x8xf32>
    %32 = arith.addf %31, %30 : vector<1x8xf32>
    %33 = arith.divf %31, %32 : vector<1x8xf32>
    %c0_19 = arith.constant 0 : index
    %c0_20 = arith.constant 0 : index
    %34 = vector.load %arg8[%c0_19, %c0_20] : memref<1x8xf32, #tpu.memory_space<vmem>>, vector<1x8xf32>
    tpu.vector_store %arg8[%c0_19, %c0_20], %33 {strides = array<i32>} : memref<1x8xf32, #tpu.memory_space<vmem>>, vector<1x8xf32>,
    return
  }
  func.func @transform_0(%arg0: i32) -> (i32, i32) {
    %c0_i32 = arith.constant 0 : i32
    %c0_i32_0 = arith.constant 0 : i32
    return %arg0, %c0_i32 : i32, i32
  }
  func.func @transform_1(%arg0: i32) -> (i32, i32) {
    %c0_i32 = arith.constant 0 : i32
    %c0_i32_0 = arith.constant 0 : i32
    %c0_i32_1 = arith.constant 0 : i32
    return %c0_i32, %c0_i32_0 : i32, i32
  }
  func.func @transform_2(%arg0: i32) -> (i32, i32) {
    %c0_i32 = arith.constant 0 : i32
    %c0_i32_0 = arith.constant 0 : i32
    %c0_i32_1 = arith.constant 0 : i32
    return %c0_i32, %c0_i32_0 : i32, i32
  }
  func.func @transform_3(%arg0: i32) -> (i32, i32) {
    %c0_i32 = arith.constant 0 : i32
    %c0_i32_0 = arith.constant 0 : i32
    %c0_i32_1 = arith.constant 0 : i32
    return %c0_i32, %c0_i32_0 : i32, i32
  }
  func.func @transform_4(%arg0: i32) -> (i32, i32) {
    %c0_i32 = arith.constant 0 : i32
    %c0_i32_0 = arith.constant 0 : i32
    %c0_i32_1 = arith.constant 0 : i32
    return %c0_i32, %c0_i32_0 : i32, i32
  }
  func.func @transform_5(%arg0: i32) -> (i32, i32) {
    %c0_i32 = arith.constant 0 : i32
    %c0_i32_0 = arith.constant 0 : i32
    %c0_i32_1 = arith.constant 0 : i32
    return %c0_i32, %c0_i32_0 : i32, i32
  }
  func.func @transform_6(%arg0: i32) -> i32 {
    %c0_i32 = arith.constant 0 : i32
    %c0_i32_0 = arith.constant 0 : i32
    return %c0_i32 : i32
  }
  func.func @transform_7(%arg0: i32) -> (i32, i32) {
    %c0_i32 = arith.constant 0 : i32
    %c0_i32_0 = arith.constant 0 : i32
    return %c0_i32, %arg0 : i32, i32
  }
}

module attributes {stable_mosaic.version = 11 : i64} {
  func.func @_mlp_kernel(%arg0: i32, %arg1: memref<8x64xbf16, #tpu.memory_space<vmem>>, %arg2: memref<64x128xbf16, #tpu.memory_space<vmem>>, %arg3: memref<1x128xf32, #tpu.memory_space<vmem>>, %arg4: memref<128x128xbf16, #tpu.memory_space<vmem>>, %arg5: memref<1x128xf32, #tpu.memory_space<vmem>>, %arg6: memref<128x1xbf16, #tpu.memory_space<vmem>>, %arg7: memref<1xf32, #tpu.memory_space<smem>>, %arg8: memref<1x8xf32, #tpu.memory_space<vmem>>) attributes {dimension_semantics = [#tpu.dimension_semantics<parallel>], iteration_bounds = array<i64: 1>, scalar_prefetch = 0 : i64, scratch_operands = 0 : i64, tpu.core_type = #tpu.core_type<tc>, window_params = [{transform_indices = @transform_0, window_bounds = array<i64: 8, 64>}, {pipeline_mode = #tpu.pipeline_mode<synchronous>, transform_indices = @transform_1, window_bounds = array<i64: 64, 128>}, {pipeline_mode = #tpu.pipeline_mode<synchronous>, transform_indices = @transform_2, window_bounds = array<i64: 1, 128>}, {pipeline_mode = #tpu.pipeline_mode<synchronous>, transform_indices = @transform_3, window_bounds = array<i64: 128, 128>}, {pipeline_mode = #tpu.pipeline_mode<synchronous>, transform_indices = @transform_4, window_bounds = array<i64: 1, 128>}, {pipeline_mode = #tpu.pipeline_mode<synchronous>, transform_indices = @transform_5, window_bounds = array<i64: 128, 1>}, {transform_indices = @transform_6, window_bounds = array<i64: 1>}, {transform_indices = @transform_7, window_bounds = array<i64: 1, 8>}]} {
    %c0 = arith.constant 0 : index
    %c0_0 = arith.constant 0 : index
    %0 = vector.load %arg1[%c0, %c0_0] : memref<8x64xbf16, #tpu.memory_space<vmem>>, vector<8x64xbf16>
    %c0_1 = arith.constant 0 : index
    %c0_2 = arith.constant 0 : index
    %1 = vector.load %arg2[%c0_1, %c0_2] : memref<64x128xbf16, #tpu.memory_space<vmem>>, vector<64x128xbf16>
    %cst = arith.constant dense<0.000000e+00> : vector<8x128xf32>
    %2 = tpu.matmul %0, %1, %cst {dimension_numbers = #tpu.dot_dimension_numbers<[1], [0], [0], [1], [0, 0, 1, 1], [], []>} : vector<8x64xbf16>, vector<64x128xbf16>, vector<8x128xf32> -> vector<8x128xf32>
    %c0_3 = arith.constant 0 : index
    %c0_4 = arith.constant 0 : index
    %3 = vector.load %arg3[%c0_3, %c0_4] : memref<1x128xf32, #tpu.memory_space<vmem>>, vector<1x128xf32>
    %4 = vector.broadcast %3 : vector<1x128xf32> to vector<8x128xf32>
    %5 = arith.addf %2, %4 : vector<8x128xf32>
    %cst_5 = arith.constant 0.000000e+00 : f32
    %6 = vector.broadcast %cst_5 : f32 to vector<8x128xf32>
    %7 = arith.cmpf ogt, %5, %6 : vector<8x128xf32>
    %cst_6 = arith.constant 2.000000e-01 : f32
    %8 = vector.broadcast %cst_6 : f32 to vector<8x128xf32>
    %9 = arith.mulf %8, %5 : vector<8x128xf32>
    %10 = arith.select %7, %5, %9 : vector<8x128xi1>, vector<8x128xf32>
    %11 = arith.truncf %10 : vector<8x128xf32> to vector<8x128xbf16>
    %c0_7 = arith.constant 0 : index
    %c0_8 = arith.constant 0 : index
    %12 = vector.load %arg4[%c0_7, %c0_8] : memref<128x128xbf16, #tpu.memory_space<vmem>>, vector<128x128xbf16>
    %cst_9 = arith.constant dense<0.000000e+00> : vector<8x128xf32>
    %13 = tpu.matmul %11, %12, %cst_9 {dimension_numbers = #tpu.dot_dimension_numbers<[1], [0], [0], [1], [0, 0, 1, 1], [], []>} : vector<8x128xbf16>, vector<128x128xbf16>, vector<8x128xf32> -> vector<8x128xf32>
    %c0_10 = arith.constant 0 : index
    %c0_11 = arith.constant 0 : index
    %14 = vector.load %arg5[%c0_10, %c0_11] : memref<1x128xf32, #tpu.memory_space<vmem>>, vector<1x128xf32>
    %15 = vector.broadcast %14 : vector<1x128xf32> to vector<8x128xf32>
    %16 = arith.addf %13, %15 : vector<8x128xf32>
    %cst_12 = arith.constant 0.000000e+00 : f32
    %17 = vector.broadcast %cst_12 : f32 to vector<8x128xf32>
    %18 = arith.cmpf ogt, %16, %17 : vector<8x128xf32>
    %cst_13 = arith.constant 2.000000e-01 : f32
    %19 = vector.broadcast %cst_13 : f32 to vector<8x128xf32>
    %20 = arith.mulf %19, %16 : vector<8x128xf32>
    %21 = arith.select %18, %16, %20 : vector<8x128xi1>, vector<8x128xf32>
    %22 = arith.truncf %21 : vector<8x128xf32> to vector<8x128xbf16>
    %c0_14 = arith.constant 0 : index
    %c0_15 = arith.constant 0 : index
    %23 = vector.load %arg6[%c0_14, %c0_15] : memref<128x1xbf16, #tpu.memory_space<vmem>>, vector<128x1xbf16>
    %cst_16 = arith.constant dense<0.000000e+00> : vector<8x1xf32>
    %24 = tpu.matmul %22, %23, %cst_16 {dimension_numbers = #tpu.dot_dimension_numbers<[1], [0], [0], [1], [0, 0, 1, 1], [], []>} : vector<8x128xbf16>, vector<128x1xbf16>, vector<8x1xf32> -> vector<8x1xf32>
    %25 = tpu.transpose %24, [1, 0] : vector<8x1xf32> -> vector<1x8xf32>
    %c0_17 = arith.constant 0 : index
    %26 = memref.load %arg7[%c0_17] : memref<1xf32, #tpu.memory_space<smem>>
    %27 = vector.broadcast %26 : f32 to vector<1x8xf32>
    %28 = arith.addf %25, %27 : vector<1x8xf32>
    %29 = arith.negf %28 : vector<1x8xf32>
    %30 = math.exp %29 : vector<1x8xf32>
    %cst_18 = arith.constant 1.000000e+00 : f32
    %31 = vector.broadcast %cst_18 : f32 to vector<1x8xf32>
    %32 = arith.addf %31, %30 : vector<1x8xf32>
    %33 = arith.divf %31, %32 : vector<1x8xf32>
    %c0_19 = arith.constant 0 : index
    %c0_20 = arith.constant 0 : index
    %34 = vector.load %arg8[%c0_19, %c0_20] : memref<1x8xf32, #tpu.memory_space<vmem>>, vector<1x8xf32>
    tpu.vector_store %arg8[%c0_19, %c0_20], %33 {strides = array<i32>} : memref<1x8xf32, #tpu.memory_space<vmem>>, vector<1x8xf32>,
    return
  }
  func.func @transform_0(%arg0: i32) -> (i32, i32) {
    %c0_i32 = arith.constant 0 : i32
    %c0_i32_0 = arith.constant 0 : i32
    return %arg0, %c0_i32 : i32, i32
  }
  func.func @transform_1(%arg0: i32) -> (i32, i32) {
    %c0_i32 = arith.constant 0 : i32
    %c0_i32_0 = arith.constant 0 : i32
    %c0_i32_1 = arith.constant 0 : i32
    return %c0_i32, %c0_i32_0 : i32, i32
  }
  func.func @transform_2(%arg0: i32) -> (i32, i32) {
    %c0_i32 = arith.constant 0 : i32
    %c0_i32_0 = arith.constant 0 : i32
    %c0_i32_1 = arith.constant 0 : i32
    return %c0_i32, %c0_i32_0 : i32, i32
  }
  func.func @transform_3(%arg0: i32) -> (i32, i32) {
    %c0_i32 = arith.constant 0 : i32
    %c0_i32_0 = arith.constant 0 : i32
    %c0_i32_1 = arith.constant 0 : i32
    return %c0_i32, %c0_i32_0 : i32, i32
  }
  func.func @transform_4(%arg0: i32) -> (i32, i32) {
    %c0_i32 = arith.constant 0 : i32
    %c0_i32_0 = arith.constant 0 : i32
    %c0_i32_1 = arith.constant 0 : i32
    return %c0_i32, %c0_i32_0 : i32, i32
  }
  func.func @transform_5(%arg0: i32) -> (i32, i32) {
    %c0_i32 = arith.constant 0 : i32
    %c0_i32_0 = arith.constant 0 : i32
    %c0_i32_1 = arith.constant 0 : i32
    return %c0_i32, %c0_i32_0 : i32, i32
  }
  func.func @transform_6(%arg0: i32) -> i32 {
    %c0_i32 = arith.constant 0 : i32
    %c0_i32_0 = arith.constant 0 : i32
    return %c0_i32 : i32
  }
  func.func @transform_7(%arg0: i32) -> (i32, i32) {
    %c0_i32 = arith.constant 0 : i32
    %c0_i32_0 = arith.constant 0 : i32
    return %c0_i32, %arg0 : i32, i32
  }
}

</mosaic_0001>

<bundles_post_ra>
// kernel: _forward.1
= control target key start
LH: loop header
LB: loop body
LE: loop exit
PB: predicated region body
PF: predicated region fallthrough
CT: control target
= control target key end

     0   :  { %13 = vsyncpa [#allocation4], 0  ;;  %s741_s0 = inlined_call_operand.vmem [shape: bf16[8,64], index: 0, kind: input, shape index: {}]   ;;  %s742_s1 = inlined_call_operand.hbm [shape: bf16[64,128], index: 1, kind: input, shape index: {}]   ;;  %s743_s2 = inlined_call_operand.vmem [shape: f32[1,128], index: 2, kind: input, shape index: {}]   ;;  %s744_s3 = inlined_call_operand.vmem [shape: bf16[128,128], index: 3, kind: input, shape index: {}]   ;;  %s745_s4 = inlined_call_operand.vmem [shape: f32[1,128], index: 4, kind: input, shape index: {}]   ;;  %s746_s5 = inlined_call_operand.vmem [shape: bf16[128,1], index: 5, kind: input, shape index: {}]   ;;  %s747_s6 = inlined_call_operand.<no memory space> [shape: f32[1], index: 6, kind: input, shape index: {}]   ;;  %s748_s7 = inlined_call_operand.hbm [shape: f32[1,8], index: 7, kind: output, shape index: {}]  }
   0x1   :  { %14 = vsyncpa [#allocation5], 0  ;;  %s585_s24 = smov [#allocation3]   ;;  %s537_s28 = scalar_lea.hbm %s742_s1, 512 }
   0x2   :  { %s22_s25 = sshll.u32 %s585_s24, 4  ;;  %p538_p0 = scmp.ne.s32.totalorder %s742_s1, %s537_s28  ;;  %s23_s25 = int_to_ptr.vmem [resolvable:$true] %s22_s25 }
   0x3   :  { %p541_p1 = scmp.lt.u32.totalorder %s537_s28, %s742_s1 }
   0x5   :  { %p543_p2 = pnand %p541_p1, %p538_p0 }
   0x7   :  { %546 = shalt.err (!%p543_p2)
}
   0x8   :  { %s547_s10 = scalar_lea.vmem %s23_s25, 512  ;;  %p552_p4 = scmp.lt.s32.totalorder %s23_s25, %s23_s25 }
   0x9   :  { %p548_p3 = scmp.ne.s32.totalorder %s23_s25, %s547_s10  ;;  %p553_p5 = scmp.lt.s32.totalorder %s547_s10, %s547_s10 }
   0xb   :  { %p554_p6 = por %p553_p5, %p552_p4 }
   0xd   :  { %p555_p7 = pnand %p554_p6, %p548_p3 }
   0xf   :  { %558 = shalt.err (!%p555_p7)
}
  0x10   :  { %s586_s11 = smov 64   ;;  %s587_s12 = smov 4  }
  0x11   :  { %28 = dma.hbm_to_vmem [thread:$0]  %s742_s1, 512, %s23_s25, [#allocation4], %s586_s11, %s586_s11, %s587_s12  }
  0x12   :  { %581 = dma.done.wait [#allocation4], 512  }
  0x13   :  { %582 = vsyncadd [#allocation4], 4294966784  ;;  %v588_v0 = vmov 0.0   ;;  %vm589_vm0 = vmmov 0   ;;  %v513_v1 = vld [vmem:[#allocation3] sm:$0xff]   ;;  %v514_v2 = vld [vmem:[#allocation3 + $0x8] sm:$0xff]   ;;  %v383_v44 = vstv %s747_s6 }
  0x14   :  { %455 = vmatprep.subr.bf16.mxu0 %v588_v0  ;;  %463 = vmatprep.mubr.msk.bf16.mxu0 %vm589_vm0, %v588_v0  ;;  %v517_v3 = vld [vmem:[%s744_s3] sm:$0xff]   ;;  %v515_v4 = vld [vmem:[#allocation3 + $0x10] sm:$0xff]   ;;  %v518_v5 = vld [vmem:[%s744_s3 + $0x8] sm:$0xff]   ;;  %vm83_vm1 = vcmask 523264   ;;  %vm391_vm4 = vcmask 57344  }
  0x15   :  { %467 = vmatprep.subr.bf16.mxu1 %v588_v0  ;;  %483 = vmatprep.mubr.msk.bf16.mxu1 %vm589_vm0, %v588_v0  ;;  %v516_v6 = vld [vmem:[#allocation3 + $0x18] sm:$0xff]   ;;  %v519_v7 = vld [vmem:[%s744_s3 + $0x10] sm:$0xff]   ;;  %v43_v8 = vld [vmem:[%s741_s0] sm:$0xf] }
  0x16   :  { %456 = vmatpush3.bf16.msra.mxu0 %v513_v1  ;;  %468 = vmatpush3.bf16.msra.mxu1 %v517_v3  ;;  %v520_v9 = vld [vmem:[%s744_s3 + $0x18] sm:$0xff]   ;;  %v521_v10 = vld [vmem:[%s744_s3 + $0x20] sm:$0xff]   ;;  %v522_v11 = vld [vmem:[%s744_s3 + $0x28] sm:$0xff]  }
  0x17   :  { %457 = vmatprep.subr.bf16.mxu0 %v588_v0  ;;  %469 = vmatprep.subr.bf16.mxu1 %v588_v0  ;;  %v523_v12 = vld [vmem:[%s744_s3 + $0x30] sm:$0xff]   ;;  %v524_v13 = vld [vmem:[%s744_s3 + $0x38] sm:$0xff]   ;;  %v525_v14 = vld [vmem:[%s746_s5] sm:$0xff]  }
  0x18   :  { %v526_v15 = vld [vmem:[%s746_s5 + $0x8] sm:$0xff]   ;;  %v527_v16 = vld [vmem:[%s746_s5 + $0x10] sm:$0xff]   ;;  %v528_v17 = vld [vmem:[%s746_s5 + $0x18] sm:$0xff]  }
  0x19   :  { %v529_v18 = vld [vmem:[%s746_s5 + $0x20] sm:$0xff]   ;;  %v530_v19 = vld [vmem:[%s746_s5 + $0x28] sm:$0xff]   ;;  %v531_v29 = vld [vmem:[%s746_s5 + $0x30] sm:$0xff]  }
  0x1a   :  { %458 = vmatpush3.bf16.msra.mxu0 %v514_v2  ;;  %470 = vmatpush3.bf16.msra.mxu1 %v518_v5  ;;  %v408_v20 = vld [vmem:[%s743_s2] ss:$0 sm:$0xff]  ;;  %v532_v30 = vld [vmem:[%s746_s5 + $0x38] sm:$0xff]  }
  0x1b   :  { %459 = vmatprep.subr.bf16.mxu0 %v588_v0  ;;  %471 = vmatprep.subr.bf16.mxu1 %v588_v0  ;;  %v414_v31 = vld [vmem:[%s745_s4] ss:$0 sm:$0xff]  ;;  %s590_s4 = smov [#allocation6]  }
  0x1c   :  { %s399_s0 = sshll.u32 %s590_s4, 4  ;;  %s400_s0 = int_to_ptr.vmem [resolvable:$true] %s399_s0 }
  0x1d   :  { %s559_s26 = scalar_lea.vmem %s400_s0, 16  ;;  %s563_s27 = scalar_lea.vmem %s400_s0, 32 }
  0x1e   :  { %460 = vmatpush3.bf16.msra.mxu0 %v515_v4  ;;  %472 = vmatpush3.bf16.msra.mxu1 %v519_v7  ;;  %p560_p8 = scmp.ne.s32.totalorder %s400_s0, %s559_s26  ;;  %p564_p9 = scmp.lt.s32.totalorder %s400_s0, %s400_s0 }
  0x1f   :  { %461 = vmatprep.subr.bf16.mxu0 %v588_v0  ;;  %473 = vmatprep.subr.bf16.mxu1 %v588_v0  ;;  %p565_p10 = scmp.lt.s32.totalorder %s563_s27, %s559_s26 }
  0x21   :  { %p566_p11 = por %p565_p10, %p564_p9 }
  0x22   :  { %462 = vmatpush3.bf16.msra.mxu0 %v516_v6  ;;  %474 = vmatpush3.bf16.msra.mxu1 %v520_v9 }
  0x23   :  { %487 = vmatprep.subr.bf16.mxu0 %v588_v0  ;;  %475 = vmatprep.subr.bf16.mxu1 %v588_v0  ;;  %p567_p12 = pnand %p566_p11, %p560_p8 }
  0x25   :  { %464 = vmatmul.mubr.msk.bf16.vlgmr.msra.gmra.mrb[0].mxu0 %vm83_vm1, %v43_v8 }
  0x26   :  { %503 = vmatprep.mubr.msk.bf16.mxu0 %vm589_vm0, %v588_v0  ;;  %476 = vmatpush3.bf16.msra.mxu1 %v521_v10 }
  0x27   :  { %477 = vmatprep.subr.bf16.mxu1 %v588_v0  ;;  %488 = vmatpush3.bf16.msra.mxu0 %v525_v14 }
  0x28   :  { %489 = vmatprep.subr.bf16.mxu0 %v588_v0 }
  0x2a   :  { %478 = vmatpush3.bf16.msra.mxu1 %v522_v11 }
  0x2b   :  { %479 = vmatprep.subr.bf16.mxu1 %v588_v0  ;;  %490 = vmatpush3.bf16.msra.mxu0 %v526_v15 }
  0x2c   :  { %491 = vmatprep.subr.bf16.mxu0 %v588_v0 }
  0x2e   :  { %480 = vmatpush3.bf16.msra.mxu1 %v523_v12 }
  0x2f   :  { %481 = vmatprep.subr.bf16.mxu1 %v588_v0  ;;  %492 = vmatpush3.bf16.msra.mxu0 %v527_v16 }
  0x30   :  { %493 = vmatprep.subr.bf16.mxu0 %v588_v0 }
  0x32   :  { %482 = vmatpush3.bf16.msra.mxu1 %v524_v13 }
  0x33   :  { %494 = vmatpush3.bf16.msra.mxu0 %v528_v17 }
  0x34   :  { %495 = vmatprep.subr.bf16.mxu0 %v588_v0 }
  0x37   :  { %496 = vmatpush3.bf16.msra.mxu0 %v529_v18 }
  0x38   :  { %497 = vmatprep.subr.bf16.mxu0 %v588_v0 }
  0x3b   :  { %498 = vmatpush3.bf16.msra.mxu0 %v530_v19 }
  0x3c   :  { %499 = vmatprep.subr.bf16.mxu0 %v588_v0 }
  0x3f   :  { %500 = vmatpush3.bf16.msra.mxu0 %v531_v29 }
  0x40   :  { %501 = vmatprep.subr.bf16.mxu0 %v588_v0 }
  0x43   :  { %502 = vmatpush3.bf16.msra.mxu0 %v532_v30 }
  0xf8   :  { %v121_v21 = vpop.f32.mrb[0].mxu0 }
  0xf9   :  { %v122_v22 = vadd.f32 %v408_v20, %v121_v21  ;;  %v465_v23 = vpop.f32.mrb[1].mxu0 }
  0xfa   :  { %v124_v24 = vpop.f32.mrb[2].mxu0 }
  0xfb   :  { %vm127_vm2 = vcmp.gt.f32.partialorder %v122_v22, 0.0  ;;  %v128_v25 = vmul.f32 0.2, %v122_v22  ;;  %v466_v26 = vpop.f32.mrb[3].mxu0 }
  0xfd   :  { %v129_v27 = vsel %vm127_vm2, %v122_v22, %v128_v25 }
  0xfe   :  { %v130_v28 = vpack.c.bf16 %v129_v27, %v129_v27 }
 0x100   :  { %484 = vmatmul.mubr.bf16.vlgmr.msra.gmra.mrb[0].mxu1 %v130_v28 }
 0x1d3   :  { %v236_v32 = vpop.f32.mrb[0].mxu1 }
 0x1d4   :  { %v237_v33 = vadd.f32 %v414_v31, %v236_v32  ;;  %v485_v34 = vpop.f32.mrb[1].mxu1 }
 0x1d5   :  { %v239_v35 = vpop.f32.mrb[2].mxu1 }
 0x1d6   :  { %vm242_vm3 = vcmp.gt.f32.partialorder %v237_v33, 0.0  ;;  %v243_v36 = vmul.f32 0.2, %v237_v33  ;;  %v486_v37 = vpop.f32.mrb[3].mxu1 }
 0x1d8   :  { %v244_v38 = vsel %vm242_vm3, %v237_v33, %v243_v36 }
 0x1d9   :  { %v245_v39 = vpack.c.bf16 %v244_v38, %v244_v38 }
 0x1db   :  { %504 = vmatmul.mubr.bf16.vlgmr.msra.gmra.mrb[4].mxu0 %v245_v39 }
 0x2ae   :  { %v344_v40 = vpop.f32.mrb[4].mxu0 }
 0x2af   :  { %350 = vxpose.xlu0.b32.start.end [1/1] (short) (narrow) %v344_v40, 8  ;;  %v505_v41 = vpop.f32.mrb[5].mxu0 }
 0x2b0   :  { %v347_v42 = vpop.f32.mrb[6].mxu0 }
 0x2b1   :  { %v506_v43 = vpop.f32.mrb[7].mxu0 }
 0x32f   :  { %v366_v45 = vpop.trf.xlu0 }
 0x330   :  { %v384_v46 = vadd.f32 %v383_v44, %v366_v45 }
 0x332   :  { %v431_v47 = vmul.f32 -1.442695, %v384_v46 }
 0x334   :  { %533 = vpow2.f32 %v431_v47 }
 0x33e   :  { %v534_v48 = vpop.eup %533 }
 0x33f   :  { %v388_v49 = vadd.f32 1.0, %v534_v48 }
 0x341   :  { %535 = vrcp.f32 %v388_v49 }
 0x34b   :  { %v536_v50 = vpop.eup %535 }
 0x34c   :  { %392 = vst.msk [vmem:[#allocation6] sm:$0x1] %vm391_vm4, %v536_v50 }
 0x34d   :  { %570 = shalt.err (!%p567_p12)
}
 0x34e   :  { %s571_s29 = scalar_lea.hbm %s748_s7, 16 }
 0x34f   :  { %p572_p13 = scmp.ne.s32.totalorder %s748_s7, %s571_s29  ;;  %p575_p0 = scmp.lt.u32.totalorder %s571_s29, %s748_s7 }
 0x351   :  { %p577_p1 = pnand %p575_p0, %p572_p13 }
 0x353   :  { %580 = shalt.err (!%p577_p1)
}
 0x354   :  { %402 = dma.vmem_to_hbm [thread:$0]  %s400_s0, 16, %s748_s7, [#allocation5]  }
 0x355   :  { %583 = dma.done.wait [#allocation5], 16  }
 0x356   :  { %584 = vsyncadd [#allocation5], 4294967280 }
 0x357   :  { %406 = vsyncpa [#allocation4], 1 }
 0x358   :  { %407 = vsyncpa [#allocation5], 1 }

// kernel: _forward.1
= control target key start
LH: loop header
LB: loop body
LE: loop exit
PB: predicated region body
PF: predicated region fallthrough
CT: control target
= control target key end

     0   :  { %13 = vsyncpa [#allocation4], 0  ;;  %s741_s0 = inlined_call_operand.vmem [shape: bf16[8,64], index: 0, kind: input, shape index: {}]   ;;  %s742_s1 = inlined_call_operand.hbm [shape: bf16[64,128], index: 1, kind: input, shape index: {}]   ;;  %s743_s2 = inlined_call_operand.vmem [shape: f32[1,128], index: 2, kind: input, shape index: {}]   ;;  %s744_s3 = inlined_call_operand.vmem [shape: bf16[128,128], index: 3, kind: input, shape index: {}]   ;;  %s745_s4 = inlined_call_operand.vmem [shape: f32[1,128], index: 4, kind: input, shape index: {}]   ;;  %s746_s5 = inlined_call_operand.vmem [shape: bf16[128,1], index: 5, kind: input, shape index: {}]   ;;  %s747_s6 = inlined_call_operand.<no memory space> [shape: f32[1], index: 6, kind: input, shape index: {}]   ;;  %s748_s7 = inlined_call_operand.hbm [shape: f32[1,8], index: 7, kind: output, shape index: {}]  }
   0x1   :  { %14 = vsyncpa [#allocation5], 0  ;;  %s585_s24 = smov [#allocation3]   ;;  %s537_s28 = scalar_lea.hbm %s742_s1, 512 }
   0x2   :  { %s22_s25 = sshll.u32 %s585_s24, 4  ;;  %p538_p0 = scmp.ne.s32.totalorder %s742_s1, %s537_s28  ;;  %s23_s25 = int_to_ptr.vmem [resolvable:$true] %s22_s25 }
   0x3   :  { %p541_p1 = scmp.lt.u32.totalorder %s537_s28, %s742_s1 }
   0x5   :  { %p543_p2 = pnand %p541_p1, %p538_p0 }
   0x7   :  { %546 = shalt.err (!%p543_p2)
}
   0x8   :  { %s547_s10 = scalar_lea.vmem %s23_s25, 512  ;;  %p552_p4 = scmp.lt.s32.totalorder %s23_s25, %s23_s25 }
   0x9   :  { %p548_p3 = scmp.ne.s32.totalorder %s23_s25, %s547_s10  ;;  %p553_p5 = scmp.lt.s32.totalorder %s547_s10, %s547_s10 }
   0xb   :  { %p554_p6 = por %p553_p5, %p552_p4 }
   0xd   :  { %p555_p7 = pnand %p554_p6, %p548_p3 }
   0xf   :  { %558 = shalt.err (!%p555_p7)
}
  0x10   :  { %s586_s11 = smov 64   ;;  %s587_s12 = smov 4  }
  0x11   :  { %28 = dma.hbm_to_vmem [thread:$0]  %s742_s1, 512, %s23_s25, [#allocation4], %s586_s11, %s586_s11, %s587_s12  }
  0x12   :  { %581 = dma.done.wait [#allocation4], 512  }
  0x13   :  { %582 = vsyncadd [#allocation4], 4294966784  ;;  %v588_v0 = vmov 0.0   ;;  %vm589_vm0 = vmmov 0   ;;  %v513_v1 = vld [vmem:[#allocation3] sm:$0xff]   ;;  %v514_v2 = vld [vmem:[#allocation3 + $0x8] sm:$0xff]   ;;  %v383_v44 = vstv %s747_s6 }
  0x14   :  { %455 = vmatprep.subr.bf16.mxu0 %v588_v0  ;;  %463 = vmatprep.mubr.msk.bf16.mxu0 %vm589_vm0, %v588_v0  ;;  %v517_v3 = vld [vmem:[%s744_s3] sm:$0xff]   ;;  %v515_v4 = vld [vmem:[#allocation3 + $0x10] sm:$0xff]   ;;  %v518_v5 = vld [vmem:[%s744_s3 + $0x8] sm:$0xff]   ;;  %vm83_vm1 = vcmask 523264   ;;  %vm391_vm4 = vcmask 57344  }
  0x15   :  { %467 = vmatprep.subr.bf16.mxu1 %v588_v0  ;;  %483 = vmatprep.mubr.msk.bf16.mxu1 %vm589_vm0, %v588_v0  ;;  %v516_v6 = vld [vmem:[#allocation3 + $0x18] sm:$0xff]   ;;  %v519_v7 = vld [vmem:[%s744_s3 + $0x10] sm:$0xff]   ;;  %v43_v8 = vld [vmem:[%s741_s0] sm:$0xf] }
  0x16   :  { %456 = vmatpush3.bf16.msra.mxu0 %v513_v1  ;;  %468 = vmatpush3.bf16.msra.mxu1 %v517_v3  ;;  %v520_v9 = vld [vmem:[%s744_s3 + $0x18] sm:$0xff]   ;;  %v521_v10 = vld [vmem:[%s744_s3 + $0x20] sm:$0xff]   ;;  %v522_v11 = vld [vmem:[%s744_s3 + $0x28] sm:$0xff]  }
  0x17   :  { %457 = vmatprep.subr.bf16.mxu0 %v588_v0  ;;  %469 = vmatprep.subr.bf16.mxu1 %v588_v0  ;;  %v523_v12 = vld [vmem:[%s744_s3 + $0x30] sm:$0xff]   ;;  %v524_v13 = vld [vmem:[%s744_s3 + $0x38] sm:$0xff]   ;;  %v525_v14 = vld [vmem:[%s746_s5] sm:$0xff]  }
  0x18   :  { %v526_v15 = vld [vmem:[%s746_s5 + $0x8] sm:$0xff]   ;;  %v527_v16 = vld [vmem:[%s746_s5 + $0x10] sm:$0xff]   ;;  %v528_v17 = vld [vmem:[%s746_s5 + $0x18] sm:$0xff]  }
  0x19   :  { %v529_v18 = vld [vmem:[%s746_s5 + $0x20] sm:$0xff]   ;;  %v530_v19 = vld [vmem:[%s746_s5 + $0x28] sm:$0xff]   ;;  %v531_v29 = vld [vmem:[%s746_s5 + $0x30] sm:$0xff]  }
  0x1a   :  { %458 = vmatpush3.bf16.msra.mxu0 %v514_v2  ;;  %470 = vmatpush3.bf16.msra.mxu1 %v518_v5  ;;  %v408_v20 = vld [vmem:[%s743_s2] ss:$0 sm:$0xff]  ;;  %v532_v30 = vld [vmem:[%s746_s5 + $0x38] sm:$0xff]  }
  0x1b   :  { %459 = vmatprep.subr.bf16.mxu0 %v588_v0  ;;  %471 = vmatprep.subr.bf16.mxu1 %v588_v0  ;;  %v414_v31 = vld [vmem:[%s745_s4] ss:$0 sm:$0xff]  ;;  %s590_s4 = smov [#allocation6]  }
  0x1c   :  { %s399_s0 = sshll.u32 %s590_s4, 4  ;;  %s400_s0 = int_to_ptr.vmem [resolvable:$true] %s399_s0 }
  0x1d   :  { %s559_s26 = scalar_lea.vmem %s400_s0, 16  ;;  %s563_s27 = scalar_lea.vmem %s400_s0, 32 }
  0x1e   :  { %460 = vmatpush3.bf16.msra.mxu0 %v515_v4  ;;  %472 = vmatpush3.bf16.msra.mxu1 %v519_v7  ;;  %p560_p8 = scmp.ne.s32.totalorder %s400_s0, %s559_s26  ;;  %p564_p9 = scmp.lt.s32.totalorder %s400_s0, %s400_s0 }
  0x1f   :  { %461 = vmatprep.subr.bf16.mxu0 %v588_v0  ;;  %473 = vmatprep.subr.bf16.mxu1 %v588_v0  ;;  %p565_p10 = scmp.lt.s32.totalorder %s563_s27, %s559_s26 }
  0x21   :  { %p566_p11 = por %p565_p10, %p564_p9 }
  0x22   :  { %462 = vmatpush3.bf16.msra.mxu0 %v516_v6  ;;  %474 = vmatpush3.bf16.msra.mxu1 %v520_v9 }
  0x23   :  { %487 = vmatprep.subr.bf16.mxu0 %v588_v0  ;;  %475 = vmatprep.subr.bf16.mxu1 %v588_v0  ;;  %p567_p12 = pnand %p566_p11, %p560_p8 }
  0x25   :  { %464 = vmatmul.mubr.msk.bf16.vlgmr.msra.gmra.mrb[0].mxu0 %vm83_vm1, %v43_v8 }
  0x26   :  { %503 = vmatprep.mubr.msk.bf16.mxu0 %vm589_vm0, %v588_v0  ;;  %476 = vmatpush3.bf16.msra.mxu1 %v521_v10 }
  0x27   :  { %477 = vmatprep.subr.bf16.mxu1 %v588_v0  ;;  %488 = vmatpush3.bf16.msra.mxu0 %v525_v14 }
  0x28   :  { %489 = vmatprep.subr.bf16.mxu0 %v588_v0 }
  0x2a   :  { %478 = vmatpush3.bf16.msra.mxu1 %v522_v11 }
  0x2b   :  { %479 = vmatprep.subr.bf16.mxu1 %v588_v0  ;;  %490 = vmatpush3.bf16.msra.mxu0 %v526_v15 }
  0x2c   :  { %491 = vmatprep.subr.bf16.mxu0 %v588_v0 }
  0x2e   :  { %480 = vmatpush3.bf16.msra.mxu1 %v523_v12 }
  0x2f   :  { %481 = vmatprep.subr.bf16.mxu1 %v588_v0  ;;  %492 = vmatpush3.bf16.msra.mxu0 %v527_v16 }
  0x30   :  { %493 = vmatprep.subr.bf16.mxu0 %v588_v0 }
  0x32   :  { %482 = vmatpush3.bf16.msra.mxu1 %v524_v13 }
  0x33   :  { %494 = vmatpush3.bf16.msra.mxu0 %v528_v17 }
  0x34   :  { %495 = vmatprep.subr.bf16.mxu0 %v588_v0 }
  0x37   :  { %496 = vmatpush3.bf16.msra.mxu0 %v529_v18 }
  0x38   :  { %497 = vmatprep.subr.bf16.mxu0 %v588_v0 }
  0x3b   :  { %498 = vmatpush3.bf16.msra.mxu0 %v530_v19 }
  0x3c   :  { %499 = vmatprep.subr.bf16.mxu0 %v588_v0 }
  0x3f   :  { %500 = vmatpush3.bf16.msra.mxu0 %v531_v29 }
  0x40   :  { %501 = vmatprep.subr.bf16.mxu0 %v588_v0 }
  0x43   :  { %502 = vmatpush3.bf16.msra.mxu0 %v532_v30 }
  0xf8   :  { %v121_v21 = vpop.f32.mrb[0].mxu0 }
  0xf9   :  { %v122_v22 = vadd.f32 %v408_v20, %v121_v21  ;;  %v465_v23 = vpop.f32.mrb[1].mxu0 }
  0xfa   :  { %v124_v24 = vpop.f32.mrb[2].mxu0 }
  0xfb   :  { %vm127_vm2 = vcmp.gt.f32.partialorder %v122_v22, 0.0  ;;  %v128_v25 = vmul.f32 0.2, %v122_v22  ;;  %v466_v26 = vpop.f32.mrb[3].mxu0 }
  0xfd   :  { %v129_v27 = vsel %vm127_vm2, %v122_v22, %v128_v25 }
  0xfe   :  { %v130_v28 = vpack.c.bf16 %v129_v27, %v129_v27 }
 0x100   :  { %484 = vmatmul.mubr.bf16.vlgmr.msra.gmra.mrb[0].mxu1 %v130_v28 }
 0x1d3   :  { %v236_v32 = vpop.f32.mrb[0].mxu1 }
 0x1d4   :  { %v237_v33 = vadd.f32 %v414_v31, %v236_v32  ;;  %v485_v34 = vpop.f32.mrb[1].mxu1 }
 0x1d5   :  { %v239_v35 = vpop.f32.mrb[2].mxu1 }
 0x1d6   :  { %vm242_vm3 = vcmp.gt.f32.partialorder %v237_v33, 0.0  ;;  %v243_v36 = vmul.f32 0.2, %v237_v33  ;;  %v486_v37 = vpop.f32.mrb[3].mxu1 }
 0x1d8   :  { %v244_v38 = vsel %vm242_vm3, %v237_v33, %v243_v36 }
 0x1d9   :  { %v245_v39 = vpack.c.bf16 %v244_v38, %v244_v38 }
 0x1db   :  { %504 = vmatmul.mubr.bf16.vlgmr.msra.gmra.mrb[4].mxu0 %v245_v39 }
 0x2ae   :  { %v344_v40 = vpop.f32.mrb[4].mxu0 }
 0x2af   :  { %350 = vxpose.xlu0.b32.start.end [1/1] (short) (narrow) %v344_v40, 8  ;;  %v505_v41 = vpop.f32.mrb[5].mxu0 }
 0x2b0   :  { %v347_v42 = vpop.f32.mrb[6].mxu0 }
 0x2b1   :  { %v506_v43 = vpop.f32.mrb[7].mxu0 }
 0x32f   :  { %v366_v45 = vpop.trf.xlu0 }
 0x330   :  { %v384_v46 = vadd.f32 %v383_v44, %v366_v45 }
 0x332   :  { %v431_v47 = vmul.f32 -1.442695, %v384_v46 }
 0x334   :  { %533 = vpow2.f32 %v431_v47 }
 0x33e   :  { %v534_v48 = vpop.eup %533 }
 0x33f   :  { %v388_v49 = vadd.f32 1.0, %v534_v48 }
 0x341   :  { %535 = vrcp.f32 %v388_v49 }
 0x34b   :  { %v536_v50 = vpop.eup %535 }
 0x34c   :  { %392 = vst.msk [vmem:[#allocation6] sm:$0x1] %vm391_vm4, %v536_v50 }
 0x34d   :  { %570 = shalt.err (!%p567_p12)
}
 0x34e   :  { %s571_s29 = scalar_lea.hbm %s748_s7, 16 }
 0x34f   :  { %p572_p13 = scmp.ne.s32.totalorder %s748_s7, %s571_s29  ;;  %p575_p0 = scmp.lt.u32.totalorder %s571_s29, %s748_s7 }
 0x351   :  { %p577_p1 = pnand %p575_p0, %p572_p13 }
 0x353   :  { %580 = shalt.err (!%p577_p1)
}
 0x354   :  { %402 = dma.vmem_to_hbm [thread:$0]  %s400_s0, 16, %s748_s7, [#allocation5]  }
 0x355   :  { %583 = dma.done.wait [#allocation5], 16  }
 0x356   :  { %584 = vsyncadd [#allocation5], 4294967280 }
 0x357   :  { %406 = vsyncpa [#allocation4], 1 }
 0x358   :  { %407 = vsyncpa [#allocation5], 1 }

</bundles_post_ra>
